<compile_context>
chip_gen: v7x
topology: tpu7x:2x2x1
jax: 0.10.0
libtpu: 0.0.40
codegen_flags: <defaults>
</compile_context>

<pallas_src>
import jax
import jax.numpy as jnp
from jax.experimental import pallas as pl
from jax.experimental.pallas import tpu as pltpu

N_MODELS = 24
N_FEATS = 3


def multi_gravity_kernel(xT_ref, w_ref, b_ref, o_ref):
    # xT_ref: (3, TN)   lane-dense column tile of inputs.
    # w_ref : (24, 3)   stacked Linear weights, resident across grid steps.
    # b_ref : (24, 1)   stacked biases, resident.
    # o_ref : (TN, 24)  row-major output tile (matches the module's (N, 24) layout).
    logx = jnp.log(xT_ref[...] + 1e-10)                       # EUP, dense (3, TN)
    y = jnp.dot(w_ref[...], logx,                             # MXU, (24, TN)
                preferred_element_type=jnp.float32)
    y = jnp.exp(y + b_ref[...])                               # VALU + EUP on dense vregs
    # Single XLU relayout to the row-major output layout; stores are masked to 24
    # lanes but the HBM writeback of the (TN, 24) block is fully contiguous.
    o_ref[...] = y.T.astype(o_ref.dtype)


def multi_gravity_forward(x, w, b, *, tn=16384, out_dtype=jnp.float32):
    """x: (N, 3) float32; w: (24, 3); b: (24,). Returns (N, 24) in out_dtype."""
    n = x.shape[0]
    assert x.shape[1] == N_FEATS
    x = x.astype(jnp.float32)

    # Tile size: multiple of 128 lanes, clamped for tiny N and capped for VMEM
    # (the (tn, 24) output block lane-pads to 128 in VMEM -> 512*tn bytes/buffer).
    n_lanes = max(128, pl.cdiv(n, 128) * 128)
    tn = pl.cdiv(max(tn, 128), 128) * 128
    tn = min(tn, n_lanes, 32768)          # keep <= 16384 on v7x (64 MiB physical VMEM)
    n_pad = pl.cdiv(n, tn) * tn

    # Lane-dense input slab (3, n_pad) built in one pass.  Tail columns padded with
    # 1.0 (log(1 + 1e-10) ~ 0 -> finite exp(b)); the padded rows are sliced off below.
    xT = x.T
    if n_pad != n:
        xT = jnp.pad(xT, ((0, 0), (0, n_pad - n)), constant_values=1.0)

    w = w.astype(jnp.float32)                          # (24, 3)
    b2 = b.astype(jnp.float32).reshape(N_MODELS, 1)    # (24, 1)

    # Adaptive scoped-VMEM limit: double-buffered in/out blocks + headroom for the
    # compiler-materialized (24, tn) / (tn, 24) intermediates around the transpose.
    in_blk = 8 * tn * 4            # (3, tn) padded to 8 sublanes
    out_blk = tn * 128 * 4         # (tn, 24) padded to 128 lanes
    vmem_bytes = 2 * (in_blk + out_blk) + out_blk + N_MODELS * tn * 4 + in_blk + (4 << 20)
    vmem_bytes = max(int(vmem_bytes), 32 << 20)

    cost = pl.CostEstimate(
        flops=2 * N_MODELS * N_FEATS * n_pad,
        transcendentals=(N_MODELS + N_FEATS) * n_pad,
        bytes_accessed=(N_FEATS + N_MODELS) * 4 * n_pad + (N_MODELS * (N_FEATS + 1)) * 4,
    )

    out = pl.pallas_call(
        multi_gravity_kernel,
        out_shape=jax.ShapeDtypeStruct((n_pad, N_MODELS), out_dtype),
        grid_spec=pltpu.PrefetchScalarGridSpec(
            num_scalar_prefetch=0,
            grid=(n_pad // tn,),
            in_specs=[
                pl.BlockSpec((N_FEATS, tn), lambda i: (0, i)),        # input column tile
                pl.BlockSpec((N_MODELS, N_FEATS), lambda i: (0, 0)),  # weights (resident)
                pl.BlockSpec((N_MODELS, 1), lambda i: (0, 0)),        # bias (resident)
            ],
            out_specs=pl.BlockSpec((tn, N_MODELS), lambda i: (i, 0)),
        ),
        compiler_params=pltpu.CompilerParams(
            dimension_semantics=("parallel",),        # shards tiles across v7x's 2 TCs
            vmem_limit_bytes=vmem_bytes,
        ),
        cost_estimate=cost,
    )(xT, w, b2)

    # Already in the module's (N, 24) layout; just drop lane padding.
    return out[:n]


def multi_gravity_ref(x, w, b):
    """Pure-JAX reference mirroring the PyTorch module."""
    xl = jnp.log(x + 1e-10)          # (N, 3)
    logy = xl @ w.T + b              # (N, 24)
    return jnp.exp(logy)


if __name__ == "__main__":
    key = jax.random.PRNGKey(0)
    kx, kw, kb = jax.random.split(key, 3)

    N = 300  # small batch; exercises lane padding + tail slicing
    # Positive inputs (distances / masses in a gravity model).
    x = jax.random.uniform(kx, (N, N_FEATS), dtype=jnp.float32,
                           minval=0.5, maxval=10.0)

    # 24 stacked nn.Linear(3, 1) params, PyTorch-default-style uniform init.
    bound = 1.0 / jnp.sqrt(float(N_FEATS))
    w = jax.random.uniform(kw, (N_MODELS, N_FEATS), dtype=jnp.float32,
                           minval=-bound, maxval=bound)
    b = jax.random.uniform(kb, (N_MODELS,), dtype=jnp.float32,
                           minval=-bound, maxval=bound)

    y_ref = multi_gravity_ref(x, w, b)

    # Default (large-tile) path: single tile for this small N.
    y = jax.block_until_ready(multi_gravity_forward(x, w, b))
    assert y.shape == (N, N_MODELS), y.shape
    assert jnp.allclose(y, y_ref, rtol=1e-4, atol=1e-5), \
        float(jnp.max(jnp.abs(y - y_ref)))

    # Multi-tile path (grid > 1) to validate the tiling / index_map.
    y2 = jax.block_until_ready(multi_gravity_forward(x, w, b, tn=128))
    assert jnp.allclose(y2, y_ref, rtol=1e-4, atol=1e-5), \
        float(jnp.max(jnp.abs(y2 - y_ref)))

    print("KERNEL_OK")
</pallas_src>

<mosaic_0001>
module attributes {stable_mosaic.version = 11 : i64} {
  func.func @multi_gravity_kernel(%arg0: i32, %arg1: memref<3x384xf32, #tpu.memory_space<vmem>>, %arg2: memref<24x3xf32, #tpu.memory_space<vmem>>, %arg3: memref<24x1xf32, #tpu.memory_space<vmem>>, %arg4: memref<384x24xf32, #tpu.memory_space<vmem>>) attributes {dimension_semantics = [#tpu.dimension_semantics<parallel>], iteration_bounds = array<i64: 1>, scalar_prefetch = 0 : i64, scratch_operands = 0 : i64, tpu.core_type = #tpu.core_type<tc>, window_params = [{transform_indices = @transform_0, window_bounds = array<i64: 3, 384>}, {pipeline_mode = #tpu.pipeline_mode<synchronous>, transform_indices = @transform_1, window_bounds = array<i64: 24, 3>}, {pipeline_mode = #tpu.pipeline_mode<synchronous>, transform_indices = @transform_2, window_bounds = array<i64: 24, 1>}, {transform_indices = @transform_3, window_bounds = array<i64: 384, 24>}]} {
    %c0 = arith.constant 0 : index
    %c0_0 = arith.constant 0 : index
    %0 = vector.load %arg1[%c0, %c0_0] : memref<3x384xf32, #tpu.memory_space<vmem>>, vector<3x384xf32>
    %cst = arith.constant 1.000000e-10 : f32
    %1 = vector.broadcast %cst : f32 to vector<3x384xf32>
    %2 = arith.addf %0, %1 : vector<3x384xf32>
    %3 = math.log %2 : vector<3x384xf32>
    %c0_1 = arith.constant 0 : index
    %c0_2 = arith.constant 0 : index
    %4 = vector.load %arg2[%c0_1, %c0_2] : memref<24x3xf32, #tpu.memory_space<vmem>>, vector<24x3xf32>
    %cst_3 = arith.constant dense<0.000000e+00> : vector<24x384xf32>
    %5 = tpu.matmul %4, %3, %cst_3 {dimension_numbers = #tpu.dot_dimension_numbers<[1], [0], [0], [1], [0, 0, 1, 1], [], []>} : vector<24x3xf32>, vector<3x384xf32>, vector<24x384xf32> -> vector<24x384xf32>
    %c0_4 = arith.constant 0 : index
    %c0_5 = arith.constant 0 : index
    %6 = vector.load %arg3[%c0_4, %c0_5] : memref<24x1xf32, #tpu.memory_space<vmem>>, vector<24x1xf32>
    %7 = vector.broadcast %6 : vector<24x1xf32> to vector<24x384xf32>
    %8 = arith.addf %5, %7 : vector<24x384xf32>
    %9 = math.exp %8 : vector<24x384xf32>
    %10 = tpu.transpose %9, [1, 0] : vector<24x384xf32> -> vector<384x24xf32>
    %c0_6 = arith.constant 0 : index
    %c0_7 = arith.constant 0 : index
    %11 = vector.load %arg4[%c0_6, %c0_7] : memref<384x24xf32, #tpu.memory_space<vmem>>, vector<384x24xf32>
    tpu.vector_store %arg4[%c0_6, %c0_7], %10 {strides = array<i32>} : memref<384x24xf32, #tpu.memory_space<vmem>>, vector<384x24xf32>,
    return
  }
  func.func @transform_0(%arg0: i32) -> (i32, i32) {
    %c0_i32 = arith.constant 0 : i32
    %c0_i32_0 = arith.constant 0 : i32
    return %c0_i32, %arg0 : i32, i32
  }
  func.func @transform_1(%arg0: i32) -> (i32, i32) {
    %c0_i32 = arith.constant 0 : i32
    %c0_i32_0 = arith.constant 0 : i32
    %c0_i32_1 = arith.constant 0 : i32
    return %c0_i32, %c0_i32_0 : i32, i32
  }
  func.func @transform_2(%arg0: i32) -> (i32, i32) {
    %c0_i32 = arith.constant 0 : i32
    %c0_i32_0 = arith.constant 0 : i32
    %c0_i32_1 = arith.constant 0 : i32
    return %c0_i32, %c0_i32_0 : i32, i32
  }
  func.func @transform_3(%arg0: i32) -> (i32, i32) {
    %c0_i32 = arith.constant 0 : i32
    %c0_i32_0 = arith.constant 0 : i32
    return %arg0, %c0_i32 : i32, i32
  }
}

</mosaic_0001>

<bundles_post_ra>
// kernel: tpu_custom_call.1
= control target key start
LH: loop header
LB: loop body
LE: loop exit
PB: predicated region body
PF: predicated region fallthrough
CT: control target
= control target key end

     0   :  { %v444_v0 = vmov 0.0   ;;  %vm445_vm0 = vmmov 0   ;;  %v446_v5 = vmov 0   ;;  %vm56_vm1 = vcmask 1042432   ;;  %s692_s0 = inlined_call_operand.vmem [shape: f32[3,384], index: 0, kind: input, shape index: {}]   ;;  %s693_s2 = inlined_call_operand.vmem [shape: f32[24,1], index: 2, kind: input, shape index: {}]   ;;  %s694_s1 = inlined_call_operand.vmem [shape: f32[24,3], index: 1, kind: input, shape index: {}]   ;;  %s695_s3 = inlined_call_operand.vmem [shape: f32[384,24], index: 3, kind: output, shape index: {}]  }
   0x1   :  { %406 = vmatprep.subr.mxu1 %v444_v0  ;;  %v15_v1 = vld [vmem:[%s692_s0 + $0x8] sm:$0x7]  ;;  %408 = vmatprep.mubr.msk.f32.mxu1 %vm445_vm0, %v444_v0  ;;  %v14_v2 = vld [vmem:[%s692_s0] sm:$0x77]  ;;  %v27_v7 = vld [vmem:[%s693_s2 + $0x10] sm:$0xff]  ;;  %vm46_vm2 = vcmask 23552  }
   0x2   :  { %v17_v3 = vadd.f32 1e-10, %v15_v1  ;;  %v16_v4 = vadd.f32 1e-10, %v14_v2  ;;  %127 = vmatprep.mubr.f32.mxu0 %v444_v0  ;;  %420 = vset.pattern.permute.xlu0 %v446_v5  ;;  %v25_v6 = vld [vmem:[%s693_s2] sm:$0xff]  ;;  %v26_v8 = vld [vmem:[%s693_s2 + $0x8] sm:$0xff] }
   0x3   :  { %421 = vset.pattern.permute.xlu1 %v446_v5  ;;  %30 = vperm.xlu0 %420, %v25_v6   ;;  %v22_v12 = vld [vmem:[%s694_s1] sm:$0xff]  ;;  %v23_v15 = vld [vmem:[%s694_s1 + $0x8] sm:$0xff]  ;;  %v24_v16 = vld [vmem:[%s694_s1 + $0x10] sm:$0xff]  ;;  %vm340_vm3 = vcmask 195584  }
   0x4   :  { %422 = vlog2.f32 %v17_v3  ;;  %40 = vperm.xlu1 %421, %v27_v7  }
   0x5   :  { %424 = vlog2.f32 %v16_v4 }
   0x7   :  { %35 = vperm.xlu0 %420, %v26_v8  }
   0xe   :  { %v423_v9 = vpop.eup %422 }
   0xf   :  { %v425_v10 = vpop.eup %424  ;;  %v21_v11 = vmul.f32 0.6931472, %v423_v9 }
  0x10   :  { %v19_v13 = vmul.f32 0.6931472, %v425_v10 }
  0x11   :  { %407 = vmatpush3.msk.msra.mxu1 %vm56_vm1, %v21_v11 }
  0x12   :  { %409 = vmatmul.mubr.msk.f32.vlgmr.msra.gmra.mrb[0].mxu1 %vm46_vm2, %v22_v12  ;;  %v45_v14 = vcombine.high %v19_v13, %v19_v13 }
  0x13   :  { %411 = vmatprep.mubr.msk.f32.mxu1 %vm445_vm0, %v444_v0 }
  0x14   :  { %393 = vmatprep.subr.msk.mxu0 %vm56_vm1, %v45_v14 }
  0x15   :  { %394 = vmatpush1.msk.msra.mxu0 %vm56_vm1, %v19_v13 }
  0x16   :  { %395 = vmatmul.mubr.msk.f32.vlgmr.msra.gmra.mrb[0].mxu0 %vm46_vm2, %v22_v12  ;;  %412 = vmatmul.mubr.msk.f32.gmra.mrb[2].mxu1 %vm46_vm2, %v23_v15 }
  0x17   :  { %133 = vmatprep.mubr.f32.mxu0 %v444_v0  ;;  %414 = vmatprep.mubr.msk.f32.mxu1 %vm445_vm0, %v444_v0 }
  0x1a   :  { %396 = vmatmul.mubr.msk.f32.gmra.mrb[2].mxu0 %vm46_vm2, %v23_v15  ;;  %415 = vmatmul.mubr.msk.f32.gmra.mrb[4].mxu1 %vm46_vm2, %v24_v16 }
  0x1b   :  { %139 = vmatprep.mubr.f32.mxu0 %v444_v0 }
  0x1e   :  { %397 = vmatmul.mubr.msk.f32.gmra.mrb[4].mxu0 %vm46_vm2, %v24_v16 }
  0x82   :  { %v31_v18 = vpop.permute.xlu0 %30 }
  0x83   :  { %v41_v35 = vpop.permute.xlu1 %40 }
  0x86   :  { %v36_v27 = vpop.permute.xlu0 %35 }
  0xe5   :  { %v212_v17 = vpop.f32.mrb[0].mxu1 }
  0xe6   :  { %v410_v19 = vpop.f32.mrb[1].mxu1  ;;  %v213_v50 = vadd.f32 %v212_v17, %v31_v18 }
  0xe8   :  { %v230_v51 = vmul.f32 1.442695, %v213_v50 }
  0xe9   :  { %v129_v20 = vpop.f32.mrb[0].mxu0  ;;  %v217_v21 = vpop.f32.mrb[2].mxu1 }
  0xea   :  { %v130_v22 = vadd.f32 %v129_v20, %v31_v18  ;;  %v131_v23 = vpop.f32.mrb[1].mxu0  ;;  %v413_v24 = vpop.f32.mrb[3].mxu1  ;;  %v218_v52 = vadd.f32 %v217_v21, %v36_v27 }
  0xeb   :  { %v132_v25 = vadd.f32 %v131_v23, %v31_v18 }
  0xec   :  { %v226_v26 = vmul.f32 1.442695, %v130_v22  ;;  %v236_v53 = vmul.f32 1.442695, %v218_v52 }
  0xed   :  { %v228_v28 = vmul.f32 1.442695, %v132_v25  ;;  %v135_v29 = vpop.f32.mrb[2].mxu0  ;;  %v222_v30 = vpop.f32.mrb[4].mxu1 }
  0xee   :  { %426 = vpow2.f32 %v226_v26  ;;  %v136_v31 = vadd.f32 %v135_v29, %v36_v27  ;;  %v137_v32 = vpop.f32.mrb[3].mxu0  ;;  %v416_v33 = vpop.f32.mrb[5].mxu1  ;;  %v223_v54 = vadd.f32 %v222_v30, %v41_v35 }
  0xef   :  { %428 = vpow2.f32 %v228_v28  ;;  %v138_v34 = vadd.f32 %v137_v32, %v36_v27 }
  0xf0   :  { %v232_v36 = vmul.f32 1.442695, %v136_v31  ;;  %v242_v55 = vmul.f32 1.442695, %v223_v54 }
  0xf1   :  { %v234_v37 = vmul.f32 1.442695, %v138_v34  ;;  %v141_v38 = vpop.f32.mrb[4].mxu0 }
  0xf2   :  { %430 = vpow2.f32 %v232_v36  ;;  %v142_v39 = vadd.f32 %v141_v38, %v41_v35  ;;  %v143_v40 = vpop.f32.mrb[5].mxu0 }
  0xf3   :  { %432 = vpow2.f32 %v234_v37  ;;  %v144_v41 = vadd.f32 %v143_v40, %v41_v35 }
  0xf4   :  { %v238_v42 = vmul.f32 1.442695, %v142_v39 }
  0xf5   :  { %v240_v43 = vmul.f32 1.442695, %v144_v41 }
  0xf6   :  { %434 = vpow2.f32 %v238_v42 }
  0xf7   :  { %436 = vpow2.f32 %v240_v43 }
  0xf8   :  { %v427_v44 = vpop.eup %426  ;;  %438 = vpow2.f32 %v230_v51 }
  0xf9   :  { %v429_v45 = vpop.eup %428  ;;  %244 = vxpose.xlu1.b32.start [1/3] (short) %v427_v44, 128  ;;  %440 = vpow2.f32 %v236_v53 }
  0xfa   :  { %276 = vxpose.xlu0.b32.start [1/3] (short) %v429_v45, 128  ;;  %442 = vpow2.f32 %v242_v55 }
  0xfc   :  { %v431_v46 = vpop.eup %430 }
  0xfd   :  { %v433_v47 = vpop.eup %432  ;;  %245 = vxpose.xlu1.b32.cont [2/3] (short) %v431_v46, 128 }
  0xfe   :  { %277 = vxpose.xlu0.b32.cont [2/3] (short) %v433_v47, 128 }
 0x100   :  { %v435_v48 = vpop.eup %434 }
 0x101   :  { %v437_v49 = vpop.eup %436  ;;  %246 = vxpose.xlu1.b32.end [3/3] (short) %v435_v48, 128 }
 0x102   :  { %278 = vxpose.xlu0.b32.end [3/3] (short) %v437_v49, 128  ;;  %v439_v56 = vpop.eup %438 }
 0x103   :  { %v441_v57 = vpop.eup %440 }
 0x104   :  { %v443_v58 = vpop.eup %442 }
 0x137   :  { %308 = vxpose.xlu0.b32.start [1/3] (short) %v439_v56, 128 }
 0x13b   :  { %309 = vxpose.xlu0.b32.cont [2/3] (short) %v441_v57, 128 }
 0x13f   :  { %310 = vxpose.xlu0.b32.end [3/3] (short) %v443_v58, 128 }
 0x179   :  { %v260_v59 = vpop.trf.xlu1 }
 0x17a   :  { %v292_v60 = vpop.trf.xlu0  ;;  %341 = vst.msk [vmem:[%s695_s3] sm:$0xff] %vm340_vm3, %v260_v59 }
 0x17b   :  { %357 = vst.msk [vmem:[%s695_s3 + $0x80] sm:$0xff] %vm340_vm3, %v292_v60 }
 0x17d   :  { %v261_v61 = vpop.trf.xlu1 }
 0x17e   :  { %v293_v62 = vpop.trf.xlu0  ;;  %342 = vst.msk [vmem:[%s695_s3 + $0x8] sm:$0xff] %vm340_vm3, %v261_v61 }
 0x17f   :  { %358 = vst.msk [vmem:[%s695_s3 + $0x88] sm:$0xff] %vm340_vm3, %v293_v62 }
 0x181   :  { %v262_v63 = vpop.trf.xlu1 }
 0x182   :  { %v294_v0 = vpop.trf.xlu0  ;;  %343 = vst.msk [vmem:[%s695_s3 + $0x10] sm:$0xff] %vm340_vm3, %v262_v63 }
 0x183   :  { %359 = vst.msk [vmem:[%s695_s3 + $0x90] sm:$0xff] %vm340_vm3, %v294_v0 }
 0x185   :  { %v263_v1 = vpop.trf.xlu1 }
 0x186   :  { %v295_v2 = vpop.trf.xlu0  ;;  %344 = vst.msk [vmem:[%s695_s3 + $0x18] sm:$0xff] %vm340_vm3, %v263_v1 }
 0x187   :  { %360 = vst.msk [vmem:[%s695_s3 + $0x98] sm:$0xff] %vm340_vm3, %v295_v2 }
 0x189   :  { %v264_v3 = vpop.trf.xlu1 }
 0x18a   :  { %v296_v4 = vpop.trf.xlu0  ;;  %345 = vst.msk [vmem:[%s695_s3 + $0x20] sm:$0xff] %vm340_vm3, %v264_v3 }
 0x18b   :  { %361 = vst.msk [vmem:[%s695_s3 + $0xa0] sm:$0xff] %vm340_vm3, %v296_v4 }
 0x18d   :  { %v265_v5 = vpop.trf.xlu1 }
 0x18e   :  { %v297_v6 = vpop.trf.xlu0  ;;  %346 = vst.msk [vmem:[%s695_s3 + $0x28] sm:$0xff] %vm340_vm3, %v265_v5 }
 0x18f   :  { %362 = vst.msk [vmem:[%s695_s3 + $0xa8] sm:$0xff] %vm340_vm3, %v297_v6 }
 0x191   :  { %v266_v7 = vpop.trf.xlu1 }
 0x192   :  { %v298_v8 = vpop.trf.xlu0  ;;  %347 = vst.msk [vmem:[%s695_s3 + $0x30] sm:$0xff] %vm340_vm3, %v266_v7 }
 0x193   :  { %363 = vst.msk [vmem:[%s695_s3 + $0xb0] sm:$0xff] %vm340_vm3, %v298_v8 }
 0x195   :  { %v267_v9 = vpop.trf.xlu1 }
 0x196   :  { %v299_v10 = vpop.trf.xlu0  ;;  %348 = vst.msk [vmem:[%s695_s3 + $0x38] sm:$0xff] %vm340_vm3, %v267_v9 }
 0x197   :  { %364 = vst.msk [vmem:[%s695_s3 + $0xb8] sm:$0xff] %vm340_vm3, %v299_v10 }
 0x199   :  { %v268_v11 = vpop.trf.xlu1 }
 0x19a   :  { %v300_v12 = vpop.trf.xlu0  ;;  %349 = vst.msk [vmem:[%s695_s3 + $0x40] sm:$0xff] %vm340_vm3, %v268_v11 }
 0x19b   :  { %365 = vst.msk [vmem:[%s695_s3 + $0xc0] sm:$0xff] %vm340_vm3, %v300_v12 }
 0x19d   :  { %v269_v13 = vpop.trf.xlu1 }
 0x19e   :  { %v301_v14 = vpop.trf.xlu0  ;;  %350 = vst.msk [vmem:[%s695_s3 + $0x48] sm:$0xff] %vm340_vm3, %v269_v13 }
 0x19f   :  { %366 = vst.msk [vmem:[%s695_s3 + $0xc8] sm:$0xff] %vm340_vm3, %v301_v14 }
 0x1a1   :  { %v270_v15 = vpop.trf.xlu1 }
 0x1a2   :  { %v302_v16 = vpop.trf.xlu0  ;;  %351 = vst.msk [vmem:[%s695_s3 + $0x50] sm:$0xff] %vm340_vm3, %v270_v15 }
 0x1a3   :  { %367 = vst.msk [vmem:[%s695_s3 + $0xd0] sm:$0xff] %vm340_vm3, %v302_v16 }
 0x1a5   :  { %v271_v17 = vpop.trf.xlu1 }
 0x1a6   :  { %v303_v18 = vpop.trf.xlu0  ;;  %352 = vst.msk [vmem:[%s695_s3 + $0x58] sm:$0xff] %vm340_vm3, %v271_v17 }
 0x1a7   :  { %368 = vst.msk [vmem:[%s695_s3 + $0xd8] sm:$0xff] %vm340_vm3, %v303_v18 }
 0x1a9   :  { %v272_v19 = vpop.trf.xlu1 }
 0x1aa   :  { %v304_v20 = vpop.trf.xlu0  ;;  %353 = vst.msk [vmem:[%s695_s3 + $0x60] sm:$0xff] %vm340_vm3, %v272_v19 }
 0x1ab   :  { %369 = vst.msk [vmem:[%s695_s3 + $0xe0] sm:$0xff] %vm340_vm3, %v304_v20 }
 0x1ad   :  { %v273_v21 = vpop.trf.xlu1 }
 0x1ae   :  { %v305_v22 = vpop.trf.xlu0  ;;  %354 = vst.msk [vmem:[%s695_s3 + $0x68] sm:$0xff] %vm340_vm3, %v273_v21 }
 0x1af   :  { %370 = vst.msk [vmem:[%s695_s3 + $0xe8] sm:$0xff] %vm340_vm3, %v305_v22 }
 0x1b1   :  { %v274_v23 = vpop.trf.xlu1 }
 0x1b2   :  { %v306_v24 = vpop.trf.xlu0  ;;  %355 = vst.msk [vmem:[%s695_s3 + $0x70] sm:$0xff] %vm340_vm3, %v274_v23 }
 0x1b3   :  { %371 = vst.msk [vmem:[%s695_s3 + $0xf0] sm:$0xff] %vm340_vm3, %v306_v24 }
 0x1b5   :  { %v275_v25 = vpop.trf.xlu1 }
 0x1b6   :  { %v307_v26 = vpop.trf.xlu0  ;;  %356 = vst.msk [vmem:[%s695_s3 + $0x78] sm:$0xff] %vm340_vm3, %v275_v25 }
 0x1b7   :  { %372 = vst.msk [vmem:[%s695_s3 + $0xf8] sm:$0xff] %vm340_vm3, %v307_v26 }
 0x1ba   :  { %v324_v27 = vpop.trf.xlu0 }
 0x1bb   :  { %373 = vst.msk [vmem:[%s695_s3 + $0x100] sm:$0xff] %vm340_vm3, %v324_v27 }
 0x1be   :  { %v325_v28 = vpop.trf.xlu0 }
 0x1bf   :  { %374 = vst.msk [vmem:[%s695_s3 + $0x108] sm:$0xff] %vm340_vm3, %v325_v28 }
 0x1c2   :  { %v326_v29 = vpop.trf.xlu0 }
 0x1c3   :  { %375 = vst.msk [vmem:[%s695_s3 + $0x110] sm:$0xff] %vm340_vm3, %v326_v29 }
 0x1c6   :  { %v327_v30 = vpop.trf.xlu0 }
 0x1c7   :  { %376 = vst.msk [vmem:[%s695_s3 + $0x118] sm:$0xff] %vm340_vm3, %v327_v30 }
 0x1ca   :  { %v328_v31 = vpop.trf.xlu0 }
 0x1cb   :  { %377 = vst.msk [vmem:[%s695_s3 + $0x120] sm:$0xff] %vm340_vm3, %v328_v31 }
 0x1ce   :  { %v329_v32 = vpop.trf.xlu0 }
 0x1cf   :  { %378 = vst.msk [vmem:[%s695_s3 + $0x128] sm:$0xff] %vm340_vm3, %v329_v32 }
 0x1d2   :  { %v330_v33 = vpop.trf.xlu0 }
 0x1d3   :  { %379 = vst.msk [vmem:[%s695_s3 + $0x130] sm:$0xff] %vm340_vm3, %v330_v33 }
 0x1d6   :  { %v331_v34 = vpop.trf.xlu0 }
 0x1d7   :  { %380 = vst.msk [vmem:[%s695_s3 + $0x138] sm:$0xff] %vm340_vm3, %v331_v34 }
 0x1da   :  { %v332_v35 = vpop.trf.xlu0 }
 0x1db   :  { %381 = vst.msk [vmem:[%s695_s3 + $0x140] sm:$0xff] %vm340_vm3, %v332_v35 }
 0x1de   :  { %v333_v36 = vpop.trf.xlu0 }
 0x1df   :  { %382 = vst.msk [vmem:[%s695_s3 + $0x148] sm:$0xff] %vm340_vm3, %v333_v36 }
 0x1e2   :  { %v334_v37 = vpop.trf.xlu0 }
 0x1e3   :  { %383 = vst.msk [vmem:[%s695_s3 + $0x150] sm:$0xff] %vm340_vm3, %v334_v37 }
 0x1e6   :  { %v335_v38 = vpop.trf.xlu0 }
 0x1e7   :  { %384 = vst.msk [vmem:[%s695_s3 + $0x158] sm:$0xff] %vm340_vm3, %v335_v38 }
 0x1ea   :  { %v336_v39 = vpop.trf.xlu0 }
 0x1eb   :  { %385 = vst.msk [vmem:[%s695_s3 + $0x160] sm:$0xff] %vm340_vm3, %v336_v39 }
 0x1ee   :  { %v337_v40 = vpop.trf.xlu0 }
 0x1ef   :  { %386 = vst.msk [vmem:[%s695_s3 + $0x168] sm:$0xff] %vm340_vm3, %v337_v40 }
 0x1f2   :  { %v338_v41 = vpop.trf.xlu0 }
 0x1f3   :  { %387 = vst.msk [vmem:[%s695_s3 + $0x170] sm:$0xff] %vm340_vm3, %v338_v41 }
 0x1f6   :  { %v339_v42 = vpop.trf.xlu0 }
 0x1f7   :  { %388 = vst.msk [vmem:[%s695_s3 + $0x178] sm:$0xff] %vm340_vm3, %v339_v42 }

</bundles_post_ra>
